<compile_context>
chip_gen: v5e
topology: v5e:2x2
jax: 0.10.0
libtpu: 0.0.40
codegen_flags: <defaults>
</compile_context>

<pallas_src>
import jax
import jax.numpy as jnp
from jax.experimental import pallas as pl
from jax.experimental.pallas import tpu as pltpu

BN_EPS = 1e-5


def _physical_vmem_bytes():
    """Per-core physical VMEM, with a conservative (v7x) fallback."""
    try:
        return int(pltpu.get_tpu_info().vmem_capacity_bytes)
    except Exception:
        return 64 * 1024 * 1024


def _simplenn_kernel(x_ref, w1_ref, w2_ref, p1_ref, p2_ref, b3_ref, o_ref):
    # ---- unpack small params (single VMEM loads, static value slices) ----
    p1 = p1_ref[...]                                   # [3, 512] f32
    b1, g1, be1 = p1[0:1, :], p1[1:2, :], p1[2:3, :]
    p2 = p2_ref[...]                                   # [4, 256] f32
    b2, g2, be2, w3 = p2[0:1, :], p2[1:2, :], p2[2:3, :], p2[3:4, :]
    b3 = b3_ref[0, 0]                                  # scalar from SMEM

    # ---- fc1 (bf16 MXU feed, f32 accumulate) -----------------------------
    x = x_ref[...].astype(jnp.bfloat16)                                   # [B, D]
    h = jnp.dot(x, w1_ref[...], preferred_element_type=jnp.float32) + b1  # [B, 512]

    # ---- bn1 (two-pass stats) + folded affine + relu ---------------------
    mu = jnp.mean(h, axis=0, keepdims=True)                               # [1, 512]
    var = jnp.mean((h - mu) * (h - mu), axis=0, keepdims=True)            # biased var
    scale = g1 * jax.lax.rsqrt(var + BN_EPS)
    shift = be1 - mu * scale
    a1 = jnp.maximum(h * scale + shift, 0.0)                              # [B, 512]

    # ---- fc2 (bf16 MXU feed, f32 accumulate) -----------------------------
    h = jnp.dot(a1.astype(jnp.bfloat16), w2_ref[...],
                preferred_element_type=jnp.float32) + b2                  # [B, 256]

    # ---- bn2 (two-pass stats) + folded affine + relu ---------------------
    mu = jnp.mean(h, axis=0, keepdims=True)
    var = jnp.mean((h - mu) * (h - mu), axis=0, keepdims=True)
    scale = g2 * jax.lax.rsqrt(var + BN_EPS)
    shift = be2 - mu * scale
    a2 = jnp.maximum(h * scale + shift, 0.0)                              # [B, 256]

    # ---- fc3 (N=1): VPU multiply + lane reduction (no padded MXU matmul) -
    z = jnp.sum(a2 * w3, axis=-1, keepdims=True) + b3                     # [B, 1]

    # ---- exact sigmoid ([B,1] -> EUP exp is negligible) -------------------
    o_ref[...] = 1.0 / (1.0 + jnp.exp(-z))


@jax.jit
def simplenn_forward(x, packed):
    """x: [B, D] f32.  packed: kernel-ready params from pack_params()."""
    w1, w2, p1, p2, b3 = packed
    B = x.shape[0]

    # Resident-VMEM estimate: f32 x + bf16 weights + packed f32 params +
    # whole-batch f32 activations (BN full-batch reduction => batch resident)
    # + bf16 copies of x / a1 feeding the MXU.
    est_bytes = (
        4 * x.size
        + 2 * (w1.size + w2.size)
        + 4 * (p1.size + p2.size + b3.size)
        + 4 * B * (512 + 512 + 256 + 256 + 1)
        + 2 * B * (x.shape[1] + 512)
    )
    phys = _physical_vmem_bytes()
    # 32 MiB floor (v5e's default scoped limit is 16 MiB), cap at ~85% of physical
    # (~54 MiB on v7x, ~108 MiB on v5e/v6e) to leave compiler-scratch headroom.
    vmem_limit = int(min(max(2 * est_bytes, 32 * 1024 * 1024), int(phys * 0.85)))

    vmem = pl.BlockSpec(memory_space=pltpu.MemorySpace.VMEM)
    smem = pl.BlockSpec(memory_space=pltpu.MemorySpace.SMEM)
    return pl.pallas_call(
        _simplenn_kernel,
        out_shape=jax.ShapeDtypeStruct((B, 1), jnp.float32),
        in_specs=[vmem, vmem, vmem, vmem, vmem, smem],
        out_specs=vmem,
        compiler_params=pltpu.CompilerParams(vmem_limit_bytes=vmem_limit),
    )(x, w1, w2, p1, p2, b3)


def init_params(key, input_dim):
    """PyTorch-default-like init (uniform +-1/sqrt(fan_in) for Linear; weight=1,
    bias=0 for BatchNorm1d). Linear weights stored [in, out]; w3 as [1, 256]."""
    ks = jax.random.split(key, 6)

    def linear(kw, kb, fan_in, fan_out):
        bound = 1.0 / jnp.sqrt(float(fan_in))
        w = jax.random.uniform(kw, (fan_in, fan_out), jnp.float32, -bound, bound)
        b = jax.random.uniform(kb, (1, fan_out), jnp.float32, -bound, bound)
        return w, b

    w1, b1 = linear(ks[0], ks[1], input_dim, 512)
    w2, b2 = linear(ks[2], ks[3], 512, 256)
    w3_col, b3 = linear(ks[4], ks[5], 256, 1)
    w3 = w3_col.reshape(1, 256)            # row-vector layout for the VPU reduction
    g1, be1 = jnp.ones((1, 512), jnp.float32), jnp.zeros((1, 512), jnp.float32)
    g2, be2 = jnp.ones((1, 256), jnp.float32), jnp.zeros((1, 256), jnp.float32)
    return (w1, b1, g1, be1, w2, b2, g2, be2, w3, b3)


def pack_params(params):
    """One-time packing into kernel-ready layout/dtypes (do NOT call per forward):
       bf16 matmul weights + two packed f32 per-feature arrays + SMEM scalar b3."""
    (w1, b1, g1, be1, w2, b2, g2, be2, w3, b3) = params
    w1_bf = w1.astype(jnp.bfloat16)                        # [D, 512] bf16
    w2_bf = w2.astype(jnp.bfloat16)                        # [512, 256] bf16
    p1 = jnp.concatenate([b1, g1, be1], axis=0)            # [3, 512] f32
    p2 = jnp.concatenate([b2, g2, be2, w3], axis=0)        # [4, 256] f32
    return (w1_bf, w2_bf, p1, p2, b3.reshape(1, 1))


def reference_forward(x, params):
    """Pure-JAX reference with the same bf16-matmul / f32-accumulate arithmetic
    and textbook (unfolded) training-mode BatchNorm + exact sigmoid."""
    (w1, b1, g1, be1, w2, b2, g2, be2, w3, b3) = params

    def bn(h, g, be):
        mu = jnp.mean(h, axis=0, keepdims=True)
        var = jnp.mean((h - mu) ** 2, axis=0, keepdims=True)
        return (h - mu) * jax.lax.rsqrt(var + BN_EPS) * g + be

    h = jnp.dot(x.astype(jnp.bfloat16), w1.astype(jnp.bfloat16),
                preferred_element_type=jnp.float32) + b1
    h = jnp.maximum(bn(h, g1, be1), 0.0)
    h = jnp.dot(h.astype(jnp.bfloat16), w2.astype(jnp.bfloat16),
                preferred_element_type=jnp.float32) + b2
    h = jnp.maximum(bn(h, g2, be2), 0.0)
    z = jnp.sum(h * w3, axis=-1, keepdims=True) + b3
    return 1.0 / (1.0 + jnp.exp(-z))


if __name__ == "__main__":
    key = jax.random.PRNGKey(0)
    k_x, k_p = jax.random.split(key)

    batch, input_dim = 8, 32
    x = jax.random.normal(k_x, (batch, input_dim), jnp.float32)
    params = init_params(k_p, input_dim)
    packed = pack_params(params)       # one-time: bf16 weights + packed small params

    out = simplenn_forward(x, packed)
    out = jax.block_until_ready(out)

    ref = reference_forward(x, params)
    assert out.shape == (batch, 1)
    # Kernel differs from the reference only by the folded BN affine reassociation
    # and MXU-vs-XLA bf16 matmul rounding -> well inside 2e-3.
    assert jnp.allclose(out, ref, atol=2e-3, rtol=2e-3), "mismatch vs JAX reference"

    print("KERNEL_OK")
</pallas_src>

<mosaic_0001>
module attributes {stable_mosaic.version = 11 : i64} {
  func.func @_simplenn_kernel(%arg0: memref<8x32xf32, #tpu.memory_space<vmem>>, %arg1: memref<32x512xbf16, #tpu.memory_space<vmem>>, %arg2: memref<512x256xbf16, #tpu.memory_space<vmem>>, %arg3: memref<3x512xf32, #tpu.memory_space<vmem>>, %arg4: memref<4x256xf32, #tpu.memory_space<vmem>>, %arg5: memref<1x1xf32, #tpu.memory_space<smem>>, %arg6: memref<8x1xf32, #tpu.memory_space<vmem>>) attributes {dimension_semantics = [], scalar_prefetch = 0 : i64, scratch_operands = 0 : i64, tpu.core_type = #tpu.core_type<tc>} {
    %c0 = arith.constant 0 : index
    %c0_0 = arith.constant 0 : index
    %0 = vector.load %arg3[%c0, %c0_0] : memref<3x512xf32, #tpu.memory_space<vmem>>, vector<3x512xf32>
    %1 = vector.extract_strided_slice %0 {offsets = [0, 0], sizes = [1, 512], strides = [1, 1]} : vector<3x512xf32> to vector<1x512xf32>
    %2 = vector.extract_strided_slice %0 {offsets = [1, 0], sizes = [1, 512], strides = [1, 1]} : vector<3x512xf32> to vector<1x512xf32>
    %3 = vector.extract_strided_slice %0 {offsets = [2, 0], sizes = [1, 512], strides = [1, 1]} : vector<3x512xf32> to vector<1x512xf32>
    %c0_1 = arith.constant 0 : index
    %c0_2 = arith.constant 0 : index
    %4 = vector.load %arg4[%c0_1, %c0_2] : memref<4x256xf32, #tpu.memory_space<vmem>>, vector<4x256xf32>
    %5 = vector.extract_strided_slice %4 {offsets = [0, 0], sizes = [1, 256], strides = [1, 1]} : vector<4x256xf32> to vector<1x256xf32>
    %6 = vector.extract_strided_slice %4 {offsets = [1, 0], sizes = [1, 256], strides = [1, 1]} : vector<4x256xf32> to vector<1x256xf32>
    %7 = vector.extract_strided_slice %4 {offsets = [2, 0], sizes = [1, 256], strides = [1, 1]} : vector<4x256xf32> to vector<1x256xf32>
    %8 = vector.extract_strided_slice %4 {offsets = [3, 0], sizes = [1, 256], strides = [1, 1]} : vector<4x256xf32> to vector<1x256xf32>
    %c0_3 = arith.constant 0 : index
    %c0_4 = arith.constant 0 : index
    %9 = memref.load %arg5[%c0_3, %c0_4] : memref<1x1xf32, #tpu.memory_space<smem>>
    %c0_5 = arith.constant 0 : index
    %c0_6 = arith.constant 0 : index
    %10 = vector.load %arg0[%c0_5, %c0_6] : memref<8x32xf32, #tpu.memory_space<vmem>>, vector<8x32xf32>
    %11 = arith.truncf %10 : vector<8x32xf32> to vector<8x32xbf16>
    %c0_7 = arith.constant 0 : index
    %c0_8 = arith.constant 0 : index
    %12 = vector.load %arg1[%c0_7, %c0_8] : memref<32x512xbf16, #tpu.memory_space<vmem>>, vector<32x512xbf16>
    %cst = arith.constant dense<0.000000e+00> : vector<8x512xf32>
    %13 = tpu.matmul %11, %12, %cst {dimension_numbers = #tpu.dot_dimension_numbers<[1], [0], [0], [1], [0, 0, 1, 1], [], []>} : vector<8x32xbf16>, vector<32x512xbf16>, vector<8x512xf32> -> vector<8x512xf32>
    %14 = vector.broadcast %1 : vector<1x512xf32> to vector<8x512xf32>
    %15 = arith.addf %13, %14 : vector<8x512xf32>
    %cst_9 = arith.constant dense<0.000000e+00> : vector<512xf32>
    %16 = vector.multi_reduction <add>, %15, %cst_9 [0] : vector<8x512xf32> to vector<512xf32>
    %17 = vector.shape_cast %16 : vector<512xf32> to vector<1x512xf32>
    %cst_10 = arith.constant 8.000000e+00 : f32
    %18 = vector.broadcast %cst_10 : f32 to vector<1x512xf32>
    %19 = arith.divf %17, %18 : vector<1x512xf32>
    %20 = vector.broadcast %19 : vector<1x512xf32> to vector<8x512xf32>
    %21 = arith.subf %15, %20 : vector<8x512xf32>
    %22 = vector.broadcast %19 : vector<1x512xf32> to vector<8x512xf32>
    %23 = arith.subf %15, %22 : vector<8x512xf32>
    %24 = arith.mulf %21, %23 : vector<8x512xf32>
    %cst_11 = arith.constant dense<0.000000e+00> : vector<512xf32>
    %25 = vector.multi_reduction <add>, %24, %cst_11 [0] : vector<8x512xf32> to vector<512xf32>
    %26 = vector.shape_cast %25 : vector<512xf32> to vector<1x512xf32>
    %cst_12 = arith.constant 8.000000e+00 : f32
    %27 = vector.broadcast %cst_12 : f32 to vector<1x512xf32>
    %28 = arith.divf %26, %27 : vector<1x512xf32>
    %cst_13 = arith.constant 9.99999974E-6 : f32
    %29 = vector.broadcast %cst_13 : f32 to vector<1x512xf32>
    %30 = arith.addf %28, %29 : vector<1x512xf32>
    %31 = math.rsqrt %30 : vector<1x512xf32>
    %32 = arith.mulf %2, %31 : vector<1x512xf32>
    %33 = arith.mulf %19, %32 : vector<1x512xf32>
    %34 = arith.subf %3, %33 : vector<1x512xf32>
    %35 = vector.broadcast %32 : vector<1x512xf32> to vector<8x512xf32>
    %36 = arith.mulf %15, %35 : vector<8x512xf32>
    %37 = vector.broadcast %34 : vector<1x512xf32> to vector<8x512xf32>
    %38 = arith.addf %36, %37 : vector<8x512xf32>
    %cst_14 = arith.constant 0.000000e+00 : f32
    %39 = vector.broadcast %cst_14 : f32 to vector<8x512xf32>
    %40 = arith.maximumf %38, %39 : vector<8x512xf32>
    %41 = arith.truncf %40 : vector<8x512xf32> to vector<8x512xbf16>
    %c0_15 = arith.constant 0 : index
    %c0_16 = arith.constant 0 : index
    %42 = vector.load %arg2[%c0_15, %c0_16] : memref<512x256xbf16, #tpu.memory_space<vmem>>, vector<512x256xbf16>
    %cst_17 = arith.constant dense<0.000000e+00> : vector<8x256xf32>
    %43 = tpu.matmul %41, %42, %cst_17 {dimension_numbers = #tpu.dot_dimension_numbers<[1], [0], [0], [1], [0, 0, 1, 1], [], []>} : vector<8x512xbf16>, vector<512x256xbf16>, vector<8x256xf32> -> vector<8x256xf32>
    %44 = vector.broadcast %5 : vector<1x256xf32> to vector<8x256xf32>
    %45 = arith.addf %43, %44 : vector<8x256xf32>
    %cst_18 = arith.constant dense<0.000000e+00> : vector<256xf32>
    %46 = vector.multi_reduction <add>, %45, %cst_18 [0] : vector<8x256xf32> to vector<256xf32>
    %47 = vector.shape_cast %46 : vector<256xf32> to vector<1x256xf32>
    %cst_19 = arith.constant 8.000000e+00 : f32
    %48 = vector.broadcast %cst_19 : f32 to vector<1x256xf32>
    %49 = arith.divf %47, %48 : vector<1x256xf32>
    %50 = vector.broadcast %49 : vector<1x256xf32> to vector<8x256xf32>
    %51 = arith.subf %45, %50 : vector<8x256xf32>
    %52 = vector.broadcast %49 : vector<1x256xf32> to vector<8x256xf32>
    %53 = arith.subf %45, %52 : vector<8x256xf32>
    %54 = arith.mulf %51, %53 : vector<8x256xf32>
    %cst_20 = arith.constant dense<0.000000e+00> : vector<256xf32>
    %55 = vector.multi_reduction <add>, %54, %cst_20 [0] : vector<8x256xf32> to vector<256xf32>
    %56 = vector.shape_cast %55 : vector<256xf32> to vector<1x256xf32>
    %cst_21 = arith.constant 8.000000e+00 : f32
    %57 = vector.broadcast %cst_21 : f32 to vector<1x256xf32>
    %58 = arith.divf %56, %57 : vector<1x256xf32>
    %cst_22 = arith.constant 9.99999974E-6 : f32
    %59 = vector.broadcast %cst_22 : f32 to vector<1x256xf32>
    %60 = arith.addf %58, %59 : vector<1x256xf32>
    %61 = math.rsqrt %60 : vector<1x256xf32>
    %62 = arith.mulf %6, %61 : vector<1x256xf32>
    %63 = arith.mulf %49, %62 : vector<1x256xf32>
    %64 = arith.subf %7, %63 : vector<1x256xf32>
    %65 = vector.broadcast %62 : vector<1x256xf32> to vector<8x256xf32>
    %66 = arith.mulf %45, %65 : vector<8x256xf32>
    %67 = vector.broadcast %64 : vector<1x256xf32> to vector<8x256xf32>
    %68 = arith.addf %66, %67 : vector<8x256xf32>
    %cst_23 = arith.constant 0.000000e+00 : f32
    %69 = vector.broadcast %cst_23 : f32 to vector<8x256xf32>
    %70 = arith.maximumf %68, %69 : vector<8x256xf32>
    %71 = vector.broadcast %8 : vector<1x256xf32> to vector<8x256xf32>
    %72 = arith.mulf %70, %71 : vector<8x256xf32>
    %cst_24 = arith.constant dense<0.000000e+00> : vector<8xf32>
    %73 = vector.multi_reduction <add>, %72, %cst_24 [1] : vector<8x256xf32> to vector<8xf32>
    %74 = vector.shape_cast %73 : vector<8xf32> to vector<8x1xf32>
    %75 = vector.broadcast %9 : f32 to vector<8x1xf32>
    %76 = arith.addf %74, %75 : vector<8x1xf32>
    %cst_25 = arith.constant 0.000000e+00 : f32
    %77 = vector.broadcast %cst_25 : f32 to vector<8x1xf32>
    %78 = arith.subf %77, %76 : vector<8x1xf32>
    %79 = math.exp %78 : vector<8x1xf32>
    %cst_26 = arith.constant 1.000000e+00 : f32
    %80 = vector.broadcast %cst_26 : f32 to vector<8x1xf32>
    %81 = arith.addf %80, %79 : vector<8x1xf32>
    %cst_27 = arith.constant 1.000000e+00 : f32
    %82 = vector.broadcast %cst_27 : f32 to vector<8x1xf32>
    %83 = arith.divf %82, %81 : vector<8x1xf32>
    %c0_28 = arith.constant 0 : index
    %c0_29 = arith.constant 0 : index
    %84 = vector.load %arg6[%c0_28, %c0_29] : memref<8x1xf32, #tpu.memory_space<vmem>>, vector<8x1xf32>
    tpu.vector_store %arg6[%c0_28, %c0_29], %83 {strides = array<i32>} : memref<8x1xf32, #tpu.memory_space<vmem>>, vector<8x1xf32>,
    return
  }
}

</mosaic_0001>

<bundles_post_ra>
// kernel: simplenn_forward.1
= control target key start
LH: loop header
LB: loop body
LE: loop exit
PB: predicated region body
PF: predicated region fallthrough
CT: control target
= control target key end

     0   :  { %12 = vsyncpa [#allocation4], 0  ;;  %s1785_s0 = inlined_call_operand.hbm [shape: f32[8,32], index: 0, kind: input, shape index: {}]   ;;  %s1786_s1 = inlined_call_operand.hbm [shape: bf16[32,512], index: 1, kind: input, shape index: {}]   ;;  %s1787_s2 = inlined_call_operand.hbm [shape: bf16[512,256], index: 2, kind: input, shape index: {}]   ;;  %s1788_s3 = inlined_call_operand.hbm [shape: f32[3,512], index: 3, kind: input, shape index: {}]   ;;  %s1789_s4 = inlined_call_operand.hbm [shape: f32[4,256], index: 4, kind: input, shape index: {}]   ;;  %s1790_s5 = inlined_call_operand.<no memory space> [shape: f32[1,1], index: 5, kind: input, shape index: {}]   ;;  %s1791_s6 = inlined_call_operand.vmem [shape: f32[8,1], index: 6, kind: output, shape index: {}]  }
   0x1   :  { %13 = vsyncpa [#allocation6], 0  ;;  %s30_s23 = sshll.u32 %s1786_s1, 4  ;;  %s31_s23 = int_to_ptr.hbm [resolvable:$true] %s30_s23 }
   0x2   :  { %14 = vsyncpa [#allocation9], 0  ;;  %s1557_s24 = smov [#allocation5]   ;;  %s57_s28 = sshll.u32 %s1788_s3, 4  ;;  %s58_s28 = int_to_ptr.hbm [resolvable:$true] %s57_s28 }
   0x3   :  { %s32_s25 = sshll.u32 %s1557_s24, 4  ;;  %s1558_s29 = smov 256   ;;  %s33_s25 = int_to_ptr.vmem [resolvable:$true] %s32_s25 }
   0x4   :  { %s1559_s30 = smov 16   ;;  %s1560_s7 = smov [#allocation8]  }
   0x5   :  { %38 = dma.hbm_to_vmem [thread:$0]  %s31_s23, 1024, %s33_s25, [#allocation6], %s1558_s29, %s1558_s29, %s1559_s30  }
   0x6   :  { %s59_s8 = sshll.u32 %s1560_s7, 4  ;;  %s20_s11 = sshll.u32 %s1785_s0, 4  ;;  %s60_s8 = int_to_ptr.vmem [resolvable:$true] %s59_s8  ;;  %s21_s11 = int_to_ptr.hbm [resolvable:$true] %s20_s11 }
   0x7   :  { %62 = dma.hbm_to_vmem [thread:$0]  %s58_s28, 256, %s60_s8, [#allocation9]  }
   0x8   :  { %s43_s13 = sshll.u32 %s1787_s2, 4  ;;  %s1561_s14 = smov [#allocation3]   ;;  %s44_s13 = int_to_ptr.hbm [resolvable:$true] %s43_s13 }
   0x9   :  { %s22_s15 = sshll.u32 %s1561_s14, 4  ;;  %s1562_s3 = smov [#allocation7]   ;;  %s23_s15 = int_to_ptr.vmem [resolvable:$true] %s22_s15 }
   0xa   :  { %25 = dma.hbm_to_vmem [thread:$0]  %s21_s11, 128, %s23_s15, [#allocation4]  }
   0xb   :  { %s45_s16 = sshll.u32 %s1562_s3, 4  ;;  %s1563_s17 = smov 128   ;;  %s46_s16 = int_to_ptr.vmem [resolvable:$true] %s45_s16 }
   0xc   :  { %s1564_s18 = smov 8   ;;  %s68_s20 = sshll.u32 %s1789_s4, 4  ;;  %s69_s20 = int_to_ptr.hbm [resolvable:$true] %s68_s20 }
   0xd   :  { %51 = dma.hbm_to_vmem [thread:$0]  %s44_s13, 8192, %s46_s16, [#allocation6], %s1563_s17, %s1563_s17, %s1564_s18  }
   0xe   :  { %s1565_s21 = smov [#allocation10]  }
   0xf   :  { %s70_s22 = sshll.u32 %s1565_s21, 4  ;;  %s71_s22 = int_to_ptr.vmem [resolvable:$true] %s70_s22 }
  0x10   :  { %73 = dma.hbm_to_vmem [thread:$0]  %s69_s20, 128, %s71_s22, [#allocation9]  }
  0x11   :  { %1551 = dma.done.wait [#allocation4], 128  }
  0x12   :  { %1552 = vsyncadd [#allocation4], 4294967168 }
  0x13   :  { %1553 = dma.done.wait [#allocation6], 9216  }
  0x14   :  { %1554 = vsyncadd [#allocation6], 4294958080 }
  0x15   :  { %1555 = dma.done.wait [#allocation9], 384  }
  0x16   :  { %1556 = vsyncadd [#allocation9], 4294966912  ;;  %v1057_v0 = vld [vmem:[#allocation5 + $0x20] sm:$0xf]  ;;  %v1337_v1 = vld [vmem:[#allocation5 + $0x2c] sm:$0xf0] }
  0x17   :  { %v1335_v2 = vld [vmem:[#allocation5 + $0x24] sm:$0xf]  ;;  %v1058_v3 = vor.u32 %v1337_v1, %v1057_v0  ;;  %v1059_v4 = vld [vmem:[#allocation5 + $0x30] sm:$0xf0]  ;;  %v1065_v5 = vld [vmem:[#allocation5 + $0x28] sm:$0xf] }
  0x18   :  { %v1338_v6 = vld [vmem:[#allocation5 + $0x34] sm:$0xf0]  ;;  %v1062_v7 = vor.u32 %v1335_v2, %v1059_v4  ;;  %v1336_v9 = vld [vmem:[#allocation5 + $0x2c] sm:$0xf]  ;;  %v1067_v10 = vld [vmem:[#allocation5 + $0x38] sm:$0xf0] }
  0x19   :  { %v1066_v8 = vor.u32 %v1338_v6, %v1065_v5  ;;  %v1041_v11 = vld [vmem:[#allocation5] sm:$0xf]  ;;  %175 = vmatpush.bf16.msra.mxu0 %v1058_v3  ;;  %v1070_v12 = vor.u32 %v1336_v9, %v1067_v10  ;;  %v1333_v13 = vld [vmem:[#allocation5 + $0xc] sm:$0xf0]  ;;  %v1331_v14 = vld [vmem:[#allocation5 + $0x4] sm:$0xf] }
  0x1a   :  { %v1043_v15 = vld [vmem:[#allocation5 + $0x10] sm:$0xf0]  ;;  %188 = vmatpush.bf16.msra.mxu1 %v1062_v7  ;;  %v1042_v16 = vor.u32 %v1333_v13, %v1041_v11  ;;  %v1049_v18 = vld [vmem:[#allocation5 + $0x8] sm:$0xf]  ;;  %v1334_v19 = vld [vmem:[#allocation5 + $0x14] sm:$0xf0] }
  0x1b   :  { %201 = vmatpush.bf16.msra.mxu2 %v1066_v8  ;;  %v1046_v17 = vor.u32 %v1331_v14, %v1043_v15  ;;  %v1332_v20 = vld [vmem:[#allocation5 + $0xc] sm:$0xf]  ;;  %214 = vmatpush.bf16.msra.mxu3 %v1070_v12  ;;  %v1050_v21 = vor.u32 %v1334_v19, %v1049_v18  ;;  %v1051_v22 = vld [vmem:[#allocation5 + $0x18] sm:$0xf0]  ;;  %vm165_vm0 = vcmask 261120   ;;  %v1566_v26 = vmov 8.0  }
  0x1c   :  { %v101_v23 = vld [vmem:[#allocation3] sm:$0xff]  ;;  %v1054_v24 = vor.u32 %v1332_v20, %v1051_v22  ;;  %1413 = vrcp.f32 %v1566_v26  ;;  %v1617_v27 = vld [vmem:[#allocation8] sm:$0x77]  ;;  %v1621_v33 = vld [vmem:[#allocation8 + $0x8] sm:$0x77]  ;;  %vm342_vm4 = vcmask 1043456  }
  0x1d   :  { %v102_v25 = vpack.c.bf16 %v101_v23, %v101_v23  ;;  %176 = vmatpush.bf16.msra.mxu0 %v1042_v16  ;;  %v113_v29 = vperm.slane %v1617_v27, 0  ;;  %v114_v30 = vperm.slane %v1617_v27, 4  ;;  %v115_v37 = vperm.slane %v1621_v33, 0  ;;  %v1133_v49 = vld [vmem:[#allocation7 + $0x70] sm:$0xf] }
  0x1e   :  { %189 = vmatpush.bf16.msra.mxu1 %v1046_v17  ;;  %v116_v40 = vperm.slane %v1621_v33, 4  ;;  %v1354_v50 = vld [vmem:[#allocation7 + $0x74] sm:$0xf0]  ;;  %v1197_v51 = vld [vmem:[#allocation7 + $0xf0] sm:$0xf] }
  0x1f   :  { %202 = vmatpush.bf16.msra.mxu2 %v1050_v21  ;;  %215 = vmatpush.bf16.msra.mxu3 %v1054_v24  ;;  %v121_v32 = vperm.slane %v113_v29, 0  ;;  %v122_v34 = vperm.slane %v114_v30, 0  ;;  %v123_v45 = vperm.slane %v115_v37, 0  ;;  %v1134_v54 = vor.u32 %v1354_v50, %v1133_v49  ;;  %v1370_v55 = vld [vmem:[#allocation7 + $0xf4] sm:$0xf0] }
  0x20   :  { %1071 = vmatmul.msk.bf16.vlgmr.msra.gmra.mxu0 %vm165_vm0, %v102_v25  ;;  %v124_v47 = vperm.slane %v116_v40, 0  ;;  %v1198_v61 = vor.u32 %v1370_v55, %v1197_v51  ;;  %v1125_v3 = vld [vmem:[#allocation7 + $0x60] sm:$0xf]  ;;  %v1352_v4 = vld [vmem:[#allocation7 + $0x64] sm:$0xf0] }
  0x21   :  { %1072 = vmatmul.msk.bf16.vlgmr.msra.gmra.mxu1 %vm165_vm0, %v102_v25  ;;  %804 = vmatpush.bf16.msrb.mxu0 %v1134_v54  ;;  %v1126_v7 = vor.u32 %v1352_v4, %v1125_v3  ;;  %v1189_v8 = vld [vmem:[#allocation7 + $0xe0] sm:$0xf]  ;;  %v1368_v9 = vld [vmem:[#allocation7 + $0xe4] sm:$0xf0]  ;;  %v1261_v14 = vld [vmem:[#allocation7 + $0x170] sm:$0xf] }
  0x22   :  { %1073 = vmatmul.msk.bf16.vlgmr.msra.gmra.mxu2 %vm165_vm0, %v102_v25  ;;  %1074 = vmatmul.msk.bf16.vlgmr.msra.gmra.mxu3 %vm165_vm0, %v102_v25  ;;  %v1414_v28 = vpop.eup %1413  ;;  %v1190_v13 = vor.u32 %v1368_v9, %v1189_v8  ;;  %v1386_v15 = vld [vmem:[#allocation7 + $0x174] sm:$0xf0]  ;;  %v1325_v19 = vld [vmem:[#allocation7 + $0x1f0] sm:$0xf]  ;;  %v1384_v40 = vld [vmem:[#allocation7 + $0x164] sm:$0xf0] }
  0x23   :  { %v246_v31 = vmul.f32 8.0, %v1414_v28  ;;  %vm250_vm1 = vweird.f32 %v1414_v28  ;;  %817 = vmatpush.bf16.msrb.mxu1 %v1198_v61  ;;  %v1262_v18 = vor.u32 %v1386_v15, %v1261_v14  ;;  %v1402_v20 = vld [vmem:[#allocation7 + $0x1f4] sm:$0xf0]  ;;  %v1117_v24 = vld [vmem:[#allocation7 + $0x50] sm:$0xf] }
  0x24   :  { %v1326_v23 = vor.u32 %v1402_v20, %v1325_v19  ;;  %v1350_v25 = vld [vmem:[#allocation7 + $0x54] sm:$0xf0]  ;;  %v1109_v50 = vld [vmem:[#allocation7 + $0x40] sm:$0xf]  ;;  %v1348_v51 = vld [vmem:[#allocation7 + $0x44] sm:$0xf0] }
  0x25   :  { %v247_v36 = vsub.f32 1.0, %v246_v31  ;;  %805 = vmatpush.bf16.msrb.mxu0 %v1126_v7  ;;  %830 = vmatpush.bf16.msrb.mxu2 %v1262_v18  ;;  %v1118_v30 = vor.u32 %v1350_v25, %v1117_v24  ;;  %v1181_v31 = vld [vmem:[#allocation7 + $0xd0] sm:$0xf]  ;;  %v1110_v54 = vor.u32 %v1348_v51, %v1109_v50  ;;  %v1173_v55 = vld [vmem:[#allocation7 + $0xc0] sm:$0xf] }
  0x26   :  { %843 = vmatpush.bf16.msrb.mxu3 %v1326_v23  ;;  %v1245_v61 = vld [vmem:[#allocation7 + $0x150] sm:$0xf]  ;;  %v1398_v4 = vld [vmem:[#allocation7 + $0x1d4] sm:$0xf0]  ;;  %v1237_v19 = vld [vmem:[#allocation7 + $0x140] sm:$0xf] }
  0x27   :  { %v248_v43 = vmul.f32 %v1414_v28, %v247_v36  ;;  %818 = vmatpush.bf16.msrb.mxu1 %v1190_v13  ;;  %v1101_v8 = vld [vmem:[#allocation7 + $0x30] sm:$0xf]  ;;  %v1346_v9 = vld [vmem:[#allocation7 + $0x34] sm:$0xf0]  ;;  %v1380_v20 = vld [vmem:[#allocation7 + $0x144] sm:$0xf0] }
  0x28   :  { %v1102_v13 = vor.u32 %v1346_v9, %v1101_v8  ;;  %v1165_v14 = vld [vmem:[#allocation7 + $0xb0] sm:$0xf]  ;;  %v1362_v15 = vld [vmem:[#allocation7 + $0xb4] sm:$0xf0]  ;;  %v1238_v23 = vor.u32 %v1380_v20, %v1237_v19  ;;  %v1301_v24 = vld [vmem:[#allocation7 + $0x1c0] sm:$0xf] }
  0x29   :  { %v249_v56 = vadd.f32 %v1414_v28, %v248_v43  ;;  %806 = vmatpush.bf16.msrb.mxu0 %v1118_v30  ;;  %v1166_v18 = vor.u32 %v1362_v15, %v1165_v14  ;;  %v1396_v25 = vld [vmem:[#allocation7 + $0x1c4] sm:$0xf0]  ;;  %v1293_v50 = vld [vmem:[#allocation7 + $0x1b0] sm:$0xf]  ;;  %v1394_v51 = vld [vmem:[#allocation7 + $0x1b4] sm:$0xf0] }
  0x2a   :  { %v1302_v30 = vor.u32 %v1396_v25, %v1301_v24  ;;  %v1285_v9 = vld [vmem:[#allocation7 + $0x1a0] sm:$0xf] }
  0x2b   :  { %v1639_v10 = vsel %vm250_vm1, %v1414_v28, %v249_v56  ;;  %v1364_v56 = vld [vmem:[#allocation7 + $0xc4] sm:$0xf0] }
  0x2d   :  { %807 = vmatpush.bf16.msrb.mxu0 %v1110_v54  ;;  %v1294_v54 = vor.u32 %v1394_v51, %v1293_v50  ;;  %v1367_v51 = vld [vmem:[#allocation7 + $0xe4] sm:$0xf] }
  0x31   :  { %808 = vmatpush.bf16.msrb.mxu0 %v1102_v13 }
  0x9d   :  { %v178_v35 = vpop.f32.mrf.mxu0 }
  0x9e   :  { %v1624_v38 = vadd.f32 %v178_v35, %v121_v32  ;;  %v191_v39 = vpop.f32.mrf.mxu1  ;;  %v1366_v32 = vld [vmem:[#allocation7 + $0xd4] sm:$0xf0] }
  0x9f   :  { %v1627_v41 = vadd.f32 %v191_v39, %v122_v34  ;;  %v1182_v37 = vor.u32 %v1366_v32, %v1181_v31  ;;  %v1253_v39 = vld [vmem:[#allocation7 + $0x160] sm:$0xf]  ;;  %v1344_v32 = vld [vmem:[#allocation7 + $0x24] sm:$0xf0] }
  0xa0   :  { %v221_v42 = vrot.slane %v1624_v38, 4  ;;  %v1093_v31 = vld [vmem:[#allocation7 + $0x20] sm:$0xf] }
  0xa1   :  { %v227_v44 = vrot.slane %v1627_v41, 4  ;;  %819 = vmatpush.bf16.msrb.mxu1 %v1182_v37  ;;  %v1094_v37 = vor.u32 %v1344_v32, %v1093_v31  ;;  %v1369_v32 = vld [vmem:[#allocation7 + $0xf4] sm:$0xf] }
  0xa2   :  { %v222_v46 = vadd.f32 %v221_v42, %v1624_v38  ;;  %v1317_v42 = vld [vmem:[#allocation7 + $0x1e0] sm:$0xf] }
  0xa3   :  { %v228_v48 = vadd.f32 %v227_v44, %v1627_v41  ;;  %809 = vmatpush.bf16.msrb.mxu0 %v1094_v37 }
  0xa4   :  { %v223_v52 = vrot.slane %v222_v46, 2 }
  0xa5   :  { %v204_v53 = vpop.f32.mrf.mxu2  ;;  %v229_v57 = vrot.slane %v228_v48, 2  ;;  %v217_v59 = vpop.f32.mrf.mxu3 }
  0xa6   :  { %v1633_v58 = vadd.f32 %v204_v53, %v123_v45  ;;  %v180_v60 = vpop.f32.mrf.mxu0  ;;  %v224_v62 = vadd.f32 %v223_v52, %v222_v46  ;;  %v1635_v63 = vadd.f32 %v217_v59, %v124_v47  ;;  %v193_v0 = vpop.f32.mrf.mxu1  ;;  %v1254_v45 = vor.u32 %v1384_v40, %v1253_v39  ;;  %v1400_v46 = vld [vmem:[#allocation7 + $0x1e4] sm:$0xf0]  ;;  %v1157_v39 = vld [vmem:[#allocation7 + $0xa0] sm:$0xf] }
  0xa7   :  { %v230_v1 = vadd.f32 %v229_v57, %v228_v48  ;;  %v1318_v49 = vor.u32 %v1400_v46, %v1317_v42  ;;  %v1174_v60 = vor.u32 %v1364_v56, %v1173_v55  ;;  %v1309_v0 = vld [vmem:[#allocation7 + $0x1d0] sm:$0xf]  ;;  %v1360_v40 = vld [vmem:[#allocation7 + $0xa4] sm:$0xf0]  ;;  %v1378_v46 = vld [vmem:[#allocation7 + $0x134] sm:$0xf0] }
  0xa8   :  { %v233_v2 = vrot.slane %v1633_v58, 4  ;;  %v225_v5 = vrot.slane %v224_v62, 1  ;;  %v239_v6 = vrot.slane %v1635_v63, 4  ;;  %831 = vmatpush.bf16.msrb.mxu2 %v1254_v45  ;;  %v1310_v7 = vor.u32 %v1398_v4, %v1309_v0  ;;  %v1229_v45 = vld [vmem:[#allocation7 + $0x130] sm:$0xf] }
  0xa9   :  { %v231_v11 = vrot.slane %v230_v1, 1  ;;  %844 = vmatpush.bf16.msrb.mxu3 %v1318_v49  ;;  %820 = vmatpush.bf16.msrb.mxu1 %v1174_v60  ;;  %v1230_v49 = vor.u32 %v1378_v46, %v1229_v45  ;;  %v1085_v55 = vld [vmem:[#allocation7 + $0x10] sm:$0xf]  ;;  %v1342_v56 = vld [vmem:[#allocation7 + $0x14] sm:$0xf0] }
  0xaa   :  { %v234_v12 = vadd.f32 %v233_v2, %v1633_v58  ;;  %v226_v16 = vadd.f32 %v225_v5, %v224_v62  ;;  %v240_v17 = vadd.f32 %v239_v6, %v1635_v63  ;;  %v1382_v62 = vld [vmem:[#allocation7 + $0x154] sm:$0xf0]  ;;  %v1086_v60 = vor.u32 %v1342_v56, %v1085_v55  ;;  %v1376_v4 = vld [vmem:[#allocation7 + $0x124] sm:$0xf0]  ;;  %v1351_v46 = vld [vmem:[#allocation7 + $0x64] sm:$0xf] }
  0xab   :  { %v232_v21 = vadd.f32 %v231_v11, %v230_v1  ;;  %v1246_v3 = vor.u32 %v1382_v62, %v1245_v61  ;;  %v1149_v61 = vld [vmem:[#allocation7 + $0x90] sm:$0xf]  ;;  %v1358_v62 = vld [vmem:[#allocation7 + $0x94] sm:$0xf0]  ;;  %v1372_v56 = vld [vmem:[#allocation7 + $0x104] sm:$0xf0] }
  0xac   :  { %v235_v22 = vrot.slane %v234_v12, 2  ;;  %v1644_v26 = vmul.f32 %v1639_v10, %v226_v16  ;;  %v241_v28 = vrot.slane %v240_v17, 2  ;;  %810 = vmatpush.bf16.msrb.mxu0 %v1086_v60  ;;  %v1390_v45 = vld [vmem:[#allocation7 + $0x194] sm:$0xf0] }
  0xad   :  { %v206_v29 = vpop.f32.mrf.mxu2  ;;  %v1647_v34 = vmul.f32 %v1639_v10, %v232_v21  ;;  %v219_v36 = vpop.f32.mrf.mxu3  ;;  %832 = vmatpush.bf16.msrb.mxu2 %v1246_v3  ;;  %845 = vmatpush.bf16.msrb.mxu3 %v1310_v7  ;;  %v1221_v3 = vld [vmem:[#allocation7 + $0x120] sm:$0xf] }
  0xae   :  { %v236_v35 = vadd.f32 %v235_v22, %v234_v12  ;;  %v256_v43 = vsub.f32 %v1624_v38, %v1644_v26  ;;  %v242_v44 = vadd.f32 %v241_v28, %v240_v17  ;;  %821 = vmatpush.bf16.msrb.mxu1 %v1166_v18  ;;  %v1222_v8 = vor.u32 %v1376_v4, %v1221_v3  ;;  %v1141_v18 = vld [vmem:[#allocation7 + $0x80] sm:$0xf] }
  0xaf   :  { %v257_v47 = vsub.f32 %v1627_v41, %v1647_v34 }
  0xb0   :  { %v237_v48 = vrot.slane %v236_v35, 1  ;;  %v260_v52 = vmul.f32 %v256_v43, %v256_v43  ;;  %v243_v53 = vrot.slane %v242_v44, 1 }
  0xb1   :  { %v261_v57 = vmul.f32 %v257_v47, %v257_v47  ;;  %833 = vmatpush.bf16.msrb.mxu2 %v1238_v23  ;;  %846 = vmatpush.bf16.msrb.mxu3 %v1302_v30  ;;  %v1353_v23 = vld [vmem:[#allocation7 + $0x74] sm:$0xf] }
  0xb2   :  { %v238_v59 = vadd.f32 %v237_v48, %v236_v35  ;;  %v264_v1 = vrot.slane %v260_v52, 4  ;;  %v244_v2 = vadd.f32 %v243_v53, %v242_v44  ;;  %v1158_v44 = vor.u32 %v1360_v40, %v1157_v39  ;;  %v1213_v39 = vld [vmem:[#allocation7 + $0x110] sm:$0xf]  ;;  %v1374_v40 = vld [vmem:[#allocation7 + $0x114] sm:$0xf0] }
  0xb3   :  { %v270_v5 = vrot.slane %v261_v57, 4 }
  0xb4   :  { %v1654_v6 = vmul.f32 %v1639_v10, %v238_v59  ;;  %v265_v11 = vadd.f32 %v264_v1, %v260_v52  ;;  %v1657_v12 = vmul.f32 %v1639_v10, %v244_v2  ;;  %822 = vmatpush.bf16.msrb.mxu1 %v1158_v44  ;;  %v1150_v2 = vor.u32 %v1358_v62, %v1149_v61 }
  0xb5   :  { %v271_v16 = vadd.f32 %v270_v5, %v261_v57  ;;  %834 = vmatpush.bf16.msrb.mxu2 %v1230_v49  ;;  %847 = vmatpush.bf16.msrb.mxu3 %v1294_v54  ;;  %v1214_v44 = vor.u32 %v1374_v40, %v1213_v39  ;;  %v1363_v39 = vld [vmem:[#allocation7 + $0xc4] sm:$0xf]  ;;  %v1175_v40 = vld [vmem:[#allocation7 + $0xc8] sm:$0xf0] }
  0xb6   :  { %v258_v17 = vsub.f32 %v1633_v58, %v1654_v6  ;;  %v266_v21 = vrot.slane %v265_v11, 2  ;;  %v259_v22 = vsub.f32 %v1635_v63, %v1657_v12 }
  0xb7   :  { %v272_v28 = vrot.slane %v271_v16, 2 }
  0xb8   :  { %v262_v29 = vmul.f32 %v258_v17, %v258_v17  ;;  %v267_v35 = vadd.f32 %v266_v21, %v265_v11  ;;  %v263_v36 = vmul.f32 %v259_v22, %v259_v22  ;;  %v1392_v11 = vld [vmem:[#allocation7 + $0x1a4] sm:$0xf0]  ;;  %823 = vmatpush.bf16.msrb.mxu1 %v1150_v2 }
  0xb9   :  { %v273_v42 = vadd.f32 %v272_v28, %v271_v16  ;;  %v1286_v15 = vor.u32 %v1392_v11, %v1285_v9  ;;  %v1077_v16 = vld [vmem:[#allocation7] sm:$0xf]  ;;  %v1340_v17 = vld [vmem:[#allocation7 + $0x4] sm:$0xf0]  ;;  %835 = vmatpush.bf16.msrb.mxu2 %v1222_v8  ;;  %v1349_v11 = vld [vmem:[#allocation7 + $0x54] sm:$0xf] }
  0xba   :  { %v276_v43 = vrot.slane %v262_v29, 4  ;;  %v268_v47 = vrot.slane %v267_v35, 1  ;;  %v282_v48 = vrot.slane %v263_v36, 4  ;;  %v1078_v21 = vor.u32 %v1340_v17, %v1077_v16  ;;  %v1356_v22 = vld [vmem:[#allocation7 + $0x84] sm:$0xf0] }
  0xbb   :  { %v274_v52 = vrot.slane %v273_v42, 1  ;;  %848 = vmatpush.bf16.msrb.mxu3 %v1286_v15  ;;  %v1142_v28 = vor.u32 %v1356_v22, %v1141_v18  ;;  %v1183_v16 = vld [vmem:[#allocation7 + $0xd8] sm:$0xf0]  ;;  %v1383_v17 = vld [vmem:[#allocation7 + $0x164] sm:$0xf] }
  0xbc   :  { %v277_v53 = vadd.f32 %v276_v43, %v262_v29  ;;  %v269_v57 = vadd.f32 %v268_v47, %v267_v35  ;;  %v283_v59 = vadd.f32 %v282_v48, %v263_v36  ;;  %v1135_v29 = vld [vmem:[#allocation7 + $0x78] sm:$0xf0]  ;;  %811 = vmatpush.bf16.msrb.mxu0 %v1078_v21  ;;  %v1127_v47 = vld [vmem:[#allocation7 + $0x68] sm:$0xf0] }
  0xbd   :  { %v275_v0 = vadd.f32 %v274_v52, %v273_v42  ;;  %v1138_v31 = vor.u32 %v1353_v23, %v1135_v29  ;;  %v1199_v35 = vld [vmem:[#allocation7 + $0xf8] sm:$0xf0]  ;;  %824 = vmatpush.bf16.msrb.mxu1 %v1142_v28  ;;  %v1277_v42 = vld [vmem:[#allocation7 + $0x190] sm:$0xf]  ;;  %v1130_v50 = vor.u32 %v1351_v46, %v1127_v47  ;;  %v1191_v52 = vld [vmem:[#allocation7 + $0xe8] sm:$0xf0]  ;;  %836 = vmatpush.bf16.msrb.mxu2 %v1214_v44 }
  0xbe   :  { %v278_v1 = vrot.slane %v277_v53, 2  ;;  %v288_v5 = vmul.f32 %v269_v57, %v1639_v10  ;;  %v284_v7 = vrot.slane %v283_v59, 2  ;;  %v1202_v37 = vor.u32 %v1369_v32, %v1199_v35  ;;  %v1269_v57 = vld [vmem:[#allocation7 + $0x180] sm:$0xf]  ;;  %v1255_v22 = vld [vmem:[#allocation7 + $0x168] sm:$0xf0] }
  0xbf   :  { %v289_v13 = vmul.f32 %v275_v0, %v1639_v10  ;;  %v1278_v49 = vor.u32 %v1390_v45, %v1277_v42  ;;  %v1194_v55 = vor.u32 %v1367_v51, %v1191_v52  ;;  %v1385_v0 = vld [vmem:[#allocation7 + $0x174] sm:$0xf]  ;;  %v1399_v23 = vld [vmem:[#allocation7 + $0x1e4] sm:$0xf]  ;;  %v1258_v29 = vor.u32 %v1383_v17, %v1255_v22  ;;  %v1111_v32 = vld [vmem:[#allocation7 + $0x48] sm:$0xf0] }
  0xc0   :  { %v279_v14 = vadd.f32 %v278_v1, %v277_v53  ;;  %v1665_v19 = vadd.f32 1e-05, %v288_v5  ;;  %v285_v20 = vadd.f32 %v284_v7, %v283_v59  ;;  %856 = vmatpush.bf16.msra.mxu0 %v1138_v31  ;;  %v1205_v53 = vld [vmem:[#allocation7 + $0x100] sm:$0xf]  ;;  %v1388_v59 = vld [vmem:[#allocation7 + $0x184] sm:$0xf0] }
  0xc1   :  { %v1667_v24 = vadd.f32 1e-05, %v289_v13  ;;  %869 = vmatpush.bf16.msra.mxu1 %v1202_v37  ;;  %849 = vmatpush.bf16.msrb.mxu3 %v1278_v49  ;;  %v1206_v61 = vor.u32 %v1372_v56, %v1205_v53  ;;  %v1270_v62 = vor.u32 %v1388_v59, %v1269_v57  ;;  %v1263_v1 = vld [vmem:[#allocation7 + $0x178] sm:$0xf0]  ;;  %v1401_v5 = vld [vmem:[#allocation7 + $0x1f4] sm:$0xf] }
  0xc2   :  { %v280_v25 = vrot.slane %v279_v14, 1  ;;  %1415 = vrsqrt.f32 %v1665_v19  ;;  %v286_v30 = vrot.slane %v285_v20, 1  ;;  %v1266_v4 = vor.u32 %v1385_v0, %v1263_v1  ;;  %v1327_v7 = vld [vmem:[#allocation7 + $0x1f8] sm:$0xf0]  ;;  %v1347_v31 = vld [vmem:[#allocation7 + $0x44] sm:$0xf] }
  0xc3   :  { %1417 = vrsqrt.f32 %v1667_v24  ;;  %v1119_v13 = vld [vmem:[#allocation7 + $0x58] sm:$0xf0]  ;;  %837 = vmatpush.bf16.msrb.mxu2 %v1206_v61  ;;  %v1114_v37 = vor.u32 %v1347_v31, %v1111_v32  ;;  %v1381_v44 = vld [vmem:[#allocation7 + $0x154] sm:$0xf]  ;;  %vm312_vm3 = vweird.f32 %v1667_v24  ;;  %v1343_v17 = vld [vmem:[#allocation7 + $0x24] sm:$0xf]  ;;  %vm302_vm7 = vweird.f32 %v1665_v19 }
  0xc4   :  { %v281_v36 = vadd.f32 %v280_v25, %v279_v14  ;;  %v287_v43 = vadd.f32 %v286_v30, %v285_v20  ;;  %857 = vmatpush.bf16.msra.mxu0 %v1130_v50  ;;  %v1365_v14 = vld [vmem:[#allocation7 + $0xd4] sm:$0xf]  ;;  %v1330_v20 = vor.u32 %v1401_v5, %v1327_v7  ;;  %v1122_v21 = vor.u32 %v1349_v11, %v1119_v13  ;;  %v1319_v30 = vld [vmem:[#allocation7 + $0x1e8] sm:$0xf0]  ;;  %v1247_v45 = vld [vmem:[#allocation7 + $0x158] sm:$0xf0] }
  0xc5   :  { %870 = vmatpush.bf16.msra.mxu1 %v1194_v55  ;;  %850 = vmatpush.bf16.msrb.mxu3 %v1270_v62  ;;  %v1186_v28 = vor.u32 %v1365_v14, %v1183_v16  ;;  %v1397_v49 = vld [vmem:[#allocation7 + $0x1d4] sm:$0xf]  ;;  %v1311_v50 = vld [vmem:[#allocation7 + $0x1d8] sm:$0xf0]  ;;  %v1239_v11 = vld [vmem:[#allocation7 + $0x148] sm:$0xf0] }
  0xc6   :  { %v290_v48 = vmul.f32 %v281_v36, %v1639_v10  ;;  %v291_v54 = vmul.f32 %v287_v43, %v1639_v10  ;;  %v1322_v36 = vor.u32 %v1399_v23, %v1319_v30  ;;  %v1178_v43 = vor.u32 %v1363_v39, %v1175_v40  ;;  %v1103_v55 = vld [vmem:[#allocation7 + $0x38] sm:$0xf0]  ;;  %v1361_v61 = vld [vmem:[#allocation7 + $0xb4] sm:$0xf]  ;;  %v1303_v16 = vld [vmem:[#allocation7 + $0x1c8] sm:$0xf0] }
  0xc7   :  { %882 = vmatpush.bf16.msra.mxu2 %v1266_v4  ;;  %v1314_v57 = vor.u32 %v1397_v49, %v1311_v50  ;;  %v1167_v62 = vld [vmem:[#allocation7 + $0xb8] sm:$0xf0] }
  0xc8   :  { %v1673_v60 = vadd.f32 1e-05, %v290_v48  ;;  %v1675_v2 = vpop.eup %1415  ;;  %v1677_v3 = vadd.f32 1e-05, %v291_v54  ;;  %858 = vmatpush.bf16.msra.mxu0 %v1122_v21  ;;  %v1250_v48 = vor.u32 %v1381_v44, %v1247_v45  ;;  %v1345_v54 = vld [vmem:[#allocation7 + $0x34] sm:$0xf]  ;;  %v1170_v7 = vor.u32 %v1361_v61, %v1167_v62 }
  0xc9   :  { %v1679_v8 = vpop.eup %1417  ;;  %v297_v9 = vmul.f32 %v1675_v2, %v1665_v19  ;;  %895 = vmatpush.bf16.msra.mxu3 %v1330_v20  ;;  %871 = vmatpush.bf16.msra.mxu1 %v1186_v28  ;;  %vm303_vm5 = vweird.f32 %v1675_v2  ;;  %v1106_v59 = vor.u32 %v1345_v54, %v1103_v55  ;;  %v1095_v20 = vld [vmem:[#allocation7 + $0x28] sm:$0xf0]  ;;  %v1359_v21 = vld [vmem:[#allocation7 + $0xa4] sm:$0xf]  ;;  %v1341_v45 = vld [vmem:[#allocation7 + $0x14] sm:$0xf] }
  0xca   :  { %1419 = vrsqrt.f32 %v1673_v60  ;;  %v307_v15 = vmul.f32 %v1679_v8, %v1667_v24  ;;  %vm313_vm2 = vweird.f32 %v1679_v8  ;;  %vm304_vm9 = vmor %vm302_vm7, %vm303_vm5  ;;  %v1098_v28 = vor.u32 %v1343_v17, %v1095_v20  ;;  %v1223_v54 = vld [vmem:[#allocation7 + $0x128] sm:$0xf0]  ;;  %v1339_v62 = vld [vmem:[#allocation7 + $0x4] sm:$0xf] }
  0xcb   :  { %1421 = vrsqrt.f32 %v1677_v3  ;;  %v298_v18 = vmul.f32 %v1675_v2, %v297_v9  ;;  %883 = vmatpush.bf16.msra.mxu2 %v1258_v29  ;;  %vm1706_vm6 = vmor %vm312_vm3, %vm313_vm2  ;;  %v1379_v9 = vld [vmem:[#allocation7 + $0x144] sm:$0xf]  ;;  %v1159_v29 = vld [vmem:[#allocation7 + $0xa8] sm:$0xf0]  ;;  %vm332_vm10 = vweird.f32 %v1677_v3  ;;  %vm322_vm13 = vweird.f32 %v1673_v60 }
  0xcc   :  { %v308_v25 = vmul.f32 %v1679_v8, %v307_v15  ;;  %859 = vmatpush.bf16.msra.mxu0 %v1114_v37  ;;  %v1242_v14 = vor.u32 %v1379_v9, %v1239_v11  ;;  %v1395_v15 = vld [vmem:[#allocation7 + $0x1c4] sm:$0xf]  ;;  %v1287_v61 = vld [vmem:[#allocation7 + $0x1a8] sm:$0xf0]  ;;  %v1389_v17 = vld [vmem:[#allocation7 + $0x194] sm:$0xf] }
  0xcd   :  { %v299_v35 = vmul.f32 0.5, %v298_v18  ;;  %896 = vmatpush.bf16.msra.mxu3 %v1322_v36  ;;  %872 = vmatpush.bf16.msra.mxu1 %v1178_v43  ;;  %v1231_v36 = vld [vmem:[#allocation7 + $0x138] sm:$0xf0]  ;;  %v1143_v11 = vld [vmem:[#allocation7 + $0x88] sm:$0xf0] }
  0xce   :  { %v309_v42 = vmul.f32 0.5, %v308_v25  ;;  %v1306_v25 = vor.u32 %v1395_v15, %v1303_v16  ;;  %v1215_v16 = vld [vmem:[#allocation7 + $0x118] sm:$0xf0] }
  0xcf   :  { %v300_v47 = vsub.f32 1.5, %v299_v35  ;;  %884 = vmatpush.bf16.msra.mxu2 %v1250_v48  ;;  %v1377_v35 = vld [vmem:[#allocation7 + $0x134] sm:$0xf] }
  0xd0   :  { %v1689_v46 = vpop.eup %1419  ;;  %v310_v52 = vsub.f32 1.5, %v309_v42  ;;  %860 = vmatpush.bf16.msra.mxu0 %v1106_v59  ;;  %v1234_v40 = vor.u32 %v1377_v35, %v1231_v36  ;;  %v1295_v42 = vld [vmem:[#allocation7 + $0x1b8] sm:$0xf0]  ;;  %v1357_v48 = vld [vmem:[#allocation7 + $0x94] sm:$0xf] }
  0xd1   :  { %v1692_v51 = vpop.eup %1421  ;;  %v317_v53 = vmul.f32 %v1689_v46, %v1673_v60  ;;  %v301_v0 = vmul.f32 %v1675_v2, %v300_v47  ;;  %897 = vmatpush.bf16.msra.mxu3 %v1314_v57  ;;  %873 = vmatpush.bf16.msra.mxu1 %v1170_v7  ;;  %vm323_vm12 = vweird.f32 %v1689_v46  ;;  %v1087_v47 = vld [vmem:[#allocation7 + $0x18] sm:$0xf0]  ;;  %v1391_v59 = vld [vmem:[#allocation7 + $0x1a4] sm:$0xf] }
  0xd2   :  { %v327_v56 = vmul.f32 %v1692_v51, %v1677_v3  ;;  %v311_v1 = vmul.f32 %v1679_v8, %v310_v52  ;;  %vm333_vm8 = vweird.f32 %v1692_v51  ;;  %v1090_v50 = vor.u32 %v1341_v45, %v1087_v47  ;;  %v1151_v52 = vld [vmem:[#allocation7 + $0x98] sm:$0xf0]  ;;  %vm324_vm14 = vmor %vm322_vm13, %vm323_vm12 }
  0xd3   :  { %v318_v5 = vmul.f32 %v1689_v46, %v317_v53  ;;  %v305_v19 = vsel %vm304_vm9, %v1675_v2, %v301_v0  ;;  %885 = vmatpush.bf16.msra.mxu2 %v1242_v14  ;;  %vm1724_vm11 = vmor %vm332_vm10, %vm333_vm8  ;;  %v1393_v2 = vld [vmem:[#allocation7 + $0x1b4] sm:$0xf]  ;;  %v1375_v53 = vld [vmem:[#allocation7 + $0x124] sm:$0xf]  ;;  %v1290_v60 = vor.u32 %v1391_v59, %v1287_v61  ;;  %vm1030_vm8 = vcmask 7168  }
  0xd4   :  { %v328_v13 = vmul.f32 %v1692_v51, %v327_v56  ;;  %v315_v24 = vsel %vm1706_vm6, %v1679_v8, %v311_v1  ;;  %v1162_v8 = vor.u32 %v1359_v21, %v1159_v29  ;;  %861 = vmatpush.bf16.msra.mxu0 %v1098_v28  ;;  %v1298_v3 = vor.u32 %v1393_v2, %v1295_v42  ;;  %v1279_v21 = vld [vmem:[#allocation7 + $0x198] sm:$0xf0]  ;;  %v1371_v28 = vld [vmem:[#allocation7 + $0x104] sm:$0xf] }
  0xd5   :  { %v319_v18 = vmul.f32 0.5, %v318_v5  ;;  %v340_v22 = vrot.slane %v315_v24, 4  ;;  %898 = vmatpush.bf16.msra.mxu3 %v1306_v25  ;;  %v1154_v56 = vor.u32 %v1357_v48, %v1151_v52  ;;  %v1226_v57 = vor.u32 %v1375_v53, %v1223_v54  ;;  %v1079_v5 = vld [vmem:[#allocation7 + $0x8] sm:$0xf0] }
  0xd6   :  { %v329_v23 = vmul.f32 0.5, %v328_v13  ;;  %874 = vmatpush.bf16.msra.mxu1 %v1162_v8  ;;  %v1082_v9 = vor.u32 %v1339_v62, %v1079_v5  ;;  %v1373_v13 = vld [vmem:[#allocation7 + $0x114] sm:$0xf]  ;;  %v1282_v25 = vor.u32 %v1389_v17, %v1279_v21 }
  0xd7   :  { %v320_v30 = vsub.f32 1.5, %v319_v18  ;;  %v343_v31 = vsel %vm342_vm4, %v305_v19, %v340_v22  ;;  %886 = vmatpush.bf16.msra.mxu2 %v1234_v40  ;;  %v1218_v20 = vor.u32 %v1373_v13, %v1215_v16  ;;  %v1387_v19 = vld [vmem:[#allocation7 + $0x184] sm:$0xf] }
  0xd8   :  { %v330_v32 = vsub.f32 1.5, %v329_v23  ;;  %v345_v37 = vrot.slane %v343_v31, 7  ;;  %862 = vmatpush.bf16.msra.mxu0 %v1090_v50 }
  0xd9   :  { %v321_v43 = vmul.f32 %v1689_v46, %v320_v30  ;;  %899 = vmatpush.bf16.msra.mxu3 %v1298_v3  ;;  %v1271_v30 = vld [vmem:[#allocation7 + $0x188] sm:$0xf0] }
  0xda   :  { %v331_v44 = vmul.f32 %v1692_v51, %v330_v32  ;;  %v349_v49 = vmul.f32 %v345_v37, %v1617_v27  ;;  %875 = vmatpush.bf16.msra.mxu1 %v1154_v56  ;;  %v1274_v40 = vor.u32 %v1387_v19, %v1271_v30 }
  0xdb   :  { %v325_v7 = vsel %vm324_vm14, %v1689_v46, %v321_v43  ;;  %887 = vmatpush.bf16.msra.mxu2 %v1226_v57 }
  0xdc   :  { %v335_v55 = vsel %vm1724_vm11, %v1692_v51, %v331_v44  ;;  %v354_v0 = vperm.slane %v349_v49, 5  ;;  %v353_v4 = vperm.slane %v349_v49, 1  ;;  %v1355_v51 = vld [vmem:[#allocation7 + $0x84] sm:$0xf]  ;;  %863 = vmatpush.bf16.msra.mxu0 %v1082_v9  ;;  %v1753_v9 = vld [vmem:[#allocation10] sm:$0xff] }
  0xdd   :  { %v341_v1 = vrot.slane %v335_v55, 4  ;;  %v1146_v18 = vor.u32 %v1355_v51, %v1143_v11  ;;  %900 = vmatpush.bf16.msra.mxu3 %v1290_v60  ;;  %v479_v21 = vperm.slane %v1753_v9, 4 }
  0xde   :  { %v362_v14 = vmul.f32 %v354_v0, %v1647_v34  ;;  %v361_v22 = vmul.f32 %v353_v4, %v1644_v26  ;;  %v1207_v34 = vld [vmem:[#allocation7 + $0x108] sm:$0xf0]  ;;  %v379_v36 = vperm.slane %v353_v4, 1  ;;  %v380_v39 = vperm.slane %v354_v0, 1 }
  0xdf   :  { %v344_v15 = vsel %vm342_vm4, %v325_v7, %v341_v1  ;;  %876 = vmatpush.bf16.msra.mxu1 %v1146_v18  ;;  %888 = vmatpush.bf16.msra.mxu2 %v1218_v20  ;;  %v1210_v35 = vor.u32 %v1371_v28, %v1207_v34  ;;  %v483_v28 = vperm.slane %v479_v21, 0 }
  0xe0   :  { %v346_v24 = vrot.slane %v344_v15, 7  ;;  %v369_v46 = vrot.slane %v362_v14, 4  ;;  %v383_v3 = vmul.f32 %v379_v36, %v1624_v38  ;;  %v384_v47 = vmul.f32 %v380_v39, %v1627_v41 }
  0xe1   :  { %901 = vmatpush.bf16.msra.mxu3 %v1282_v25 }
  0xe2   :  { %v350_v23 = vmul.f32 %v346_v24, %v1621_v33  ;;  %v371_v29 = vsel %vm342_vm4, %v361_v22, %v369_v46 }
  0xe3   :  { %v373_v31 = vrot.slane %v371_v29, 6  ;;  %889 = vmatpush.bf16.msra.mxu2 %v1210_v35 }
  0xe4   :  { %v356_v8 = vperm.slane %v350_v23, 5  ;;  %v355_v32 = vperm.slane %v350_v23, 1 }
  0xe5   :  { %v377_v37 = vsub.f32 %v1617_v27, %v373_v31  ;;  %902 = vmatpush.bf16.msra.mxu3 %v1274_v40 }
  0xe6   :  { %v364_v26 = vmul.f32 %v356_v8, %v1657_v12  ;;  %v363_v44 = vmul.f32 %v355_v32, %v1654_v6  ;;  %v381_v53 = vperm.slane %v355_v32, 1  ;;  %v382_v54 = vperm.slane %v356_v8, 1 }
  0xe7   :  { %v389_v42 = vperm.slane %v377_v37, 2  ;;  %v390_v43 = vperm.slane %v377_v37, 6 }
  0xe8   :  { %v370_v2 = vrot.slane %v364_v26, 4  ;;  %v385_v61 = vmul.f32 %v381_v53, %v1633_v58  ;;  %v386_v62 = vmul.f32 %v382_v54, %v1635_v63  ;;  %v478_v58 = vperm.slane %v1753_v9, 0 }
  0xe9   :  { %v397_v45 = vperm.slane %v389_v42, 2  ;;  %v398_v48 = vperm.slane %v390_v43, 2 }
  0xea   :  { %v372_v49 = vsel %vm342_vm4, %v363_v44, %v370_v2  ;;  %v482_v11 = vperm.slane %v478_v58, 0 }
  0xeb   :  { %v374_v12 = vrot.slane %v372_v49, 6  ;;  %v401_v27 = vadd.f32 %v397_v45, %v383_v3  ;;  %v402_v50 = vadd.f32 %v398_v48, %v384_v47 }
  0xed   :  { %v378_v52 = vsub.f32 %v1621_v33, %v374_v12  ;;  %v405_v55 = vmax.f32 %v401_v27, 0.0  ;;  %v406_v56 = vmax.f32 %v402_v50, 0.0 }
  0xef   :  { %v391_v6 = vperm.slane %v378_v52, 2  ;;  %v392_v57 = vperm.slane %v378_v52, 6  ;;  %v409_v59 = vpack.c.bf16 %v405_v55, %v405_v55  ;;  %v410_v38 = vpack.c.bf16 %v406_v56, %v406_v56 }
  0xf1   :  { %v399_v41 = vperm.slane %v391_v6, 2  ;;  %v400_v0 = vperm.slane %v392_v57, 2  ;;  %812 = vmatmul.bf16.vlgmr.msrb.gmra.mxu0 %v409_v59  ;;  %825 = vmatmul.bf16.vlgmr.msrb.gmra.mxu1 %v410_v38 }
  0xf3   :  { %v403_v1 = vadd.f32 %v399_v41, %v385_v61  ;;  %v404_v4 = vadd.f32 %v400_v0, %v386_v62 }
  0xf5   :  { %v407_v5 = vmax.f32 %v403_v1, 0.0  ;;  %v408_v33 = vmax.f32 %v404_v4, 0.0 }
  0xf7   :  { %v411_v7 = vpack.c.bf16 %v407_v5, %v407_v5  ;;  %v412_v60 = vpack.c.bf16 %v408_v33, %v408_v33 }
  0xf9   :  { %838 = vmatmul.bf16.vlgmr.msrb.gmra.mxu2 %v411_v7  ;;  %851 = vmatmul.bf16.vlgmr.msrb.gmra.mxu3 %v412_v60 }
 0x101   :  { %864 = vmatmul.bf16.vlgmr.msra.gmra.mxu0 %v409_v59  ;;  %877 = vmatmul.bf16.vlgmr.msra.gmra.mxu1 %v410_v38 }
 0x109   :  { %890 = vmatmul.bf16.vlgmr.msra.gmra.mxu2 %v411_v7  ;;  %903 = vmatmul.bf16.vlgmr.msra.gmra.mxu3 %v412_v60 }
 0x16e   :  { %v813_v63 = vpop.f32.mrf.mxu0  ;;  %v826_v51 = vpop.f32.mrf.mxu1 }
 0x16f   :  { %v814_v13 = vadd.f32 %v813_v63, %v482_v11 }
 0x171   :  { %v827_v16 = vadd.f32 %v826_v51, %v814_v13 }
 0x176   :  { %v815_v14 = vpop.f32.mrf.mxu0  ;;  %v828_v15 = vpop.f32.mrf.mxu1 }
 0x17c   :  { %v839_v17 = vpop.f32.mrf.mxu2  ;;  %v852_v24 = vpop.f32.mrf.mxu3 }
 0x17d   :  { %v840_v18 = vadd.f32 %v839_v17, %v827_v16 }
 0x17e   :  { %v865_v46 = vpop.f32.mrf.mxu0  ;;  %v878_v22 = vpop.f32.mrf.mxu1 }
 0x17f   :  { %v1756_v20 = vadd.f32 %v852_v24, %v840_v18  ;;  %v866_v8 = vadd.f32 %v865_v46, %v483_v28 }
 0x181   :  { %v908_v23 = vrot.slane %v1756_v20, 4  ;;  %v879_v26 = vadd.f32 %v878_v22, %v866_v8 }
 0x183   :  { %v909_v25 = vadd.f32 %v908_v23, %v1756_v20 }
 0x184   :  { %v841_v34 = vpop.f32.mrf.mxu2  ;;  %v854_v29 = vpop.f32.mrf.mxu3 }
 0x185   :  { %v910_v19 = vrot.slane %v909_v25, 2 }
 0x186   :  { %v867_v31 = vpop.f32.mrf.mxu0  ;;  %v880_v32 = vpop.f32.mrf.mxu1 }
 0x187   :  { %v911_v30 = vadd.f32 %v910_v19, %v909_v25 }
 0x189   :  { %v912_v35 = vrot.slane %v911_v30, 1 }
 0x18b   :  { %v913_v36 = vadd.f32 %v912_v35, %v911_v30 }
 0x18c   :  { %v891_v37 = vpop.f32.mrf.mxu2  ;;  %v904_v39 = vpop.f32.mrf.mxu3 }
 0x18d   :  { %v920_v40 = vmul.f32 %v913_v36, %v1639_v10  ;;  %v892_v2 = vadd.f32 %v891_v37, %v879_v26 }
 0x18f   :  { %v922_v42 = vsub.f32 %v1756_v20, %v920_v40  ;;  %v1763_v43 = vadd.f32 %v904_v39, %v892_v2  ;;  %v998_v2 = vperm.slane %v1753_v9, 3 }
 0x191   :  { %v924_v44 = vmul.f32 %v922_v42, %v922_v42  ;;  %v914_v3 = vrot.slane %v1763_v43, 4  ;;  %v999_v42 = vperm.slane %v1753_v9, 7 }
 0x193   :  { %v926_v45 = vrot.slane %v924_v44, 4  ;;  %v915_v47 = vadd.f32 %v914_v3, %v1763_v43 }
 0x194   :  { %v893_v48 = vpop.f32.mrf.mxu2  ;;  %v906_v49 = vpop.f32.mrf.mxu3 }
 0x195   :  { %v927_v12 = vadd.f32 %v926_v45, %v924_v44  ;;  %v916_v27 = vrot.slane %v915_v47, 2  ;;  %v1002_v49 = vperm.slane %v998_v2, 3 }
 0x197   :  { %v928_v50 = vrot.slane %v927_v12, 2  ;;  %v917_v52 = vadd.f32 %v916_v27, %v915_v47 }
 0x199   :  { %v929_v53 = vadd.f32 %v928_v50, %v927_v12  ;;  %v918_v54 = vrot.slane %v917_v52, 1  ;;  %v1003_v12 = vperm.slane %v999_v42, 3 }
 0x19b   :  { %v930_v55 = vrot.slane %v929_v53, 1  ;;  %v919_v56 = vadd.f32 %v918_v54, %v917_v52 }
 0x19d   :  { %v931_v6 = vadd.f32 %v930_v55, %v929_v53  ;;  %v921_v57 = vmul.f32 %v919_v56, %v1639_v10 }
 0x19f   :  { %v923_v59 = vsub.f32 %v1763_v43, %v921_v57  ;;  %v938_v38 = vmul.f32 %v931_v6, %v1639_v10 }
 0x1a1   :  { %v925_v61 = vmul.f32 %v923_v59, %v923_v59  ;;  %v940_v62 = vadd.f32 1e-05, %v938_v38 }
 0x1a3   :  { %v932_v41 = vrot.slane %v925_v61, 4  ;;  %1423 = vrsqrt.f32 %v940_v62  ;;  %vm948_vm3 = vweird.f32 %v940_v62 }
 0x1a5   :  { %v933_v0 = vadd.f32 %v932_v41, %v925_v61 }
 0x1a7   :  { %v934_v1 = vrot.slane %v933_v0, 2 }
 0x1a9   :  { %v935_v4 = vadd.f32 %v934_v1, %v933_v0  ;;  %v1424_v7 = vpop.eup %1423 }
 0x1aa   :  { %v943_v63 = vmul.f32 %v1424_v7, %v940_v62  ;;  %vm949_vm1 = vweird.f32 %v1424_v7 }
 0x1ab   :  { %v936_v5 = vrot.slane %v935_v4, 1  ;;  %vm950_vm5 = vmor %vm948_vm3, %vm949_vm1 }
 0x1ac   :  { %v944_v51 = vmul.f32 %v1424_v7, %v943_v63 }
 0x1ad   :  { %v937_v33 = vadd.f32 %v936_v5, %v935_v4 }
 0x1ae   :  { %v945_v14 = vmul.f32 0.5, %v944_v51 }
 0x1af   :  { %v939_v60 = vmul.f32 %v937_v33, %v1639_v10 }
 0x1b0   :  { %v946_v17 = vsub.f32 1.5, %v945_v14 }
 0x1b1   :  { %v941_v58 = vadd.f32 1e-05, %v939_v60 }
 0x1b2   :  { %v947_v18 = vmul.f32 %v1424_v7, %v946_v17 }
 0x1b3   :  { %1425 = vrsqrt.f32 %v941_v58  ;;  %vm958_vm0 = vweird.f32 %v941_v58 }
 0x1b4   :  { %v951_v22 = vsel %vm950_vm5, %v1424_v7, %v947_v18 }
 0x1b9   :  { %v1426_v11 = vpop.eup %1425 }
 0x1ba   :  { %v953_v13 = vmul.f32 %v1426_v11, %v941_v58  ;;  %vm959_vm15 = vweird.f32 %v1426_v11 }
 0x1bb   :  { %vm960_vm2 = vmor %vm958_vm0, %vm959_vm15 }
 0x1bc   :  { %v954_v15 = vmul.f32 %v1426_v11, %v953_v13 }
 0x1be   :  { %v955_v16 = vmul.f32 0.5, %v954_v15 }
 0x1c0   :  { %v956_v24 = vsub.f32 1.5, %v955_v16 }
 0x1c2   :  { %v957_v21 = vmul.f32 %v1426_v11, %v956_v24 }
 0x1c4   :  { %v961_v46 = vsel %vm960_vm2, %v1426_v11, %v957_v21 }
 0x1c5   :  { %v964_v10 = vrot.slane %v961_v46, 4 }
 0x1c7   :  { %v965_v23 = vsel %vm342_vm4, %v951_v22, %v964_v10 }
 0x1c8   :  { %v966_v25 = vrot.slane %v965_v23, 7 }
 0x1ca   :  { %v968_v28 = vmul.f32 %v966_v25, %v1753_v9 }
 0x1cc   :  { %v970_v34 = vperm.slane %v968_v28, 1  ;;  %v971_v29 = vperm.slane %v968_v28, 5 }
 0x1ce   :  { %v975_v19 = vmul.f32 %v971_v29, %v921_v57  ;;  %v974_v30 = vmul.f32 %v970_v34, %v920_v40  ;;  %v983_v36 = vperm.slane %v970_v34, 1  ;;  %v984_v26 = vperm.slane %v971_v29, 1 }
 0x1d0   :  { %v978_v8 = vrot.slane %v975_v19, 4  ;;  %v985_v44 = vmul.f32 %v983_v36, %v1756_v20  ;;  %v986_v3 = vmul.f32 %v984_v26, %v1763_v43 }
 0x1d2   :  { %v979_v31 = vsel %vm342_vm4, %v974_v30, %v978_v8 }
 0x1d3   :  { %v980_v32 = vrot.slane %v979_v31, 6 }
 0x1d5   :  { %v982_v35 = vsub.f32 %v1753_v9, %v980_v32  ;;  %v1009_v9 = vstv %s1790_s5 }
 0x1d7   :  { %v988_v37 = vperm.slane %v982_v35, 2  ;;  %v989_v39 = vperm.slane %v982_v35, 6 }
 0x1d9   :  { %v992_v45 = vperm.slane %v988_v37, 2  ;;  %v993_v40 = vperm.slane %v989_v39, 2 }
 0x1db   :  { %v994_v47 = vadd.f32 %v992_v45, %v985_v44  ;;  %v995_v48 = vadd.f32 %v993_v40, %v986_v3 }
 0x1dd   :  { %v996_v27 = vmax.f32 %v994_v47, 0.0  ;;  %v997_v50 = vmax.f32 %v995_v48, 0.0 }
 0x1df   :  { %v1004_v52 = vmul.f32 %v1002_v49, %v996_v27  ;;  %v1005_v53 = vmul.f32 %v1003_v12, %v997_v50 }
 0x1e1   :  { %v1006_v54 = vadd.f32 %v1005_v53, %v1004_v52 }
 0x1e3   :  { %1007 = vadd.xlane.f32.xlu0 %v1006_v54 }
 0x256   :  { %v1008_v55 = vpop.xlane.xlu0 %1007 }
 0x257   :  { %v1010_v20 = vadd.f32 %v1009_v9, %v1008_v55 }
 0x259   :  { %v1011_v56 = vsub.f32 0.0, %v1010_v20 }
 0x25b   :  { %v1012_v43 = vmul.f32 1.442695, %v1011_v56 }
 0x25d   :  { %1427 = vpow2.f32 %v1012_v43 }
 0x263   :  { %v1428_v6 = vpop.eup %1427 }
 0x264   :  { %v1014_v57 = vadd.f32 1.0, %v1428_v6 }
 0x266   :  { %1429 = vrcp.f32 %v1014_v57  ;;  %v1026_v41 = vand.u32 2147483648, %v1014_v57  ;;  %v1024_v0 = vand.u32 2147483647, %v1014_v57  ;;  %vm1020_vm6 = vweird.f32 %v1014_v57 }
 0x268   :  { %v1027_v4 = vor.u32 1.1754944e-38, %v1026_v41  ;;  %vm1025_vm9 = vcmp.eq.f32.partialorder %v1024_v0, 8.507059e+37 }
 0x26c   :  { %v1430_v59 = vpop.eup %1429 }
 0x26d   :  { %v1016_v38 = vmul.f32 %v1430_v59, %v1014_v57  ;;  %vm1021_vm4 = vweird.f32 %v1430_v59 }
 0x26e   :  { %vm1022_vm7 = vmor %vm1020_vm6, %vm1021_vm4 }
 0x26f   :  { %v1017_v61 = vsub.f32 1.0, %v1016_v38 }
 0x271   :  { %v1018_v62 = vmul.f32 %v1430_v59, %v1017_v61 }
 0x273   :  { %v1019_v1 = vadd.f32 %v1430_v59, %v1018_v62 }
 0x275   :  { %v1023_v5 = vsel %vm1022_vm7, %v1430_v59, %v1019_v1 }
 0x276   :  { %v1028_v33 = vsel %vm1025_vm9, %v1027_v4, %v1023_v5 }
 0x277   :  { %1031 = vst.msk [vmem:[%s1791_s6] sm:$0xff] %vm1030_vm8, %v1028_v33 }
 0x278   :  { %1036 = vsyncpa [#allocation4], 1 }
 0x279   :  { %1037 = vsyncpa [#allocation6], 1 }
 0x27a   :  { %1038 = vsyncpa [#allocation9], 1 }

</bundles_post_ra>
